<compile_context>
chip_gen: v6e
topology: v6e:2x2x1
jax: 0.10.0
libtpu: 0.0.40
codegen_flags: <defaults>
</compile_context>

<pallas_src>
import functools

import jax
import jax.numpy as jnp
from jax.experimental import pallas as pl
from jax.experimental.pallas import tpu as pltpu


def _round_up(v, m):
    return (v + m - 1) // m * m


def _vmem_capacity_bytes():
    try:
        return int(pltpu.get_tpu_info().vmem_capacity_bytes)
    except Exception:
        return 64 << 20  # conservative fallback (v7x per-TensorCore VMEM)


def _mxu_target_k():
    """Target contraction depth per MXU call: ~128 on v5e/older, ~256 on v6e/v7x."""
    try:
        kind = jax.devices()[0].device_kind.lower()
    except Exception:
        return 256
    if ("v5e" in kind) or ("v5 lite" in kind) or ("v5lite" in kind) \
            or ("v4" in kind) or ("v3" in kind):
        return 128
    return 256


def _conv_gn_relu_kernel(x_ref, w_ref, abc_ref, mask_ref, o_ref, xs_ref, *,
                         ksize, stride, group_kd, n_dout, wp, eps, do_act,
                         inv_count):
    """Fused Conv3d + GroupNorm(1 group) + ReLU for ONE sample (grid=(N,)).

    x_ref   : (1, Dp, Cin, Wext)        bf16  padded input, one flattened (Hp*Wp)
                                              plane per padded depth (lane-dense,
                                              zero tail of >= off_max lanes).
    w_ref   : (ngroups, Cout, Kg)       bf16  K-stacked conv weights; Kg =
                                              group_kd*k^2*Cin, K ordered
                                              (kd_local, kh, kw, Cin).
    abc_ref : (3, Cout, 1)              f32   packed (bias, gamma, beta).
    mask_ref: (hw_pad, 1)               f32   1.0 at plane positions kept after the
                                              crop / stride subsample, else 0.0.
    o_ref   : (1, Do, Cout, hw_pad)     bf16  dense-plane conv, normalized in place.
    xs_ref  : (Kg, hw_pad)              bf16  VMEM scratch for the K-stacked RHS.
    """
    k = ksize
    cin = x_ref.shape[2]
    cout = o_ref.shape[2]
    hw_pad = o_ref.shape[3]
    ngroups = w_ref.shape[0]

    b_col = abc_ref[0]                       # (Cout, 1) f32
    g_col = abc_ref[1]                       # (Cout, 1) f32
    beta_col = abc_ref[2]                    # (Cout, 1) f32
    mask_col = mask_ref[...]                 # (hw_pad, 1) f32

    # Hoist loop-invariant broadcasts out of the fori_loop bodies.
    bias_b = jnp.broadcast_to(b_col, (cout, hw_pad))

    def conv_plane(d):
        # Stage the shifted lane-slices of this output depth's receptive field into
        # the K-stacked scratch, one tap group at a time, then contract each group
        # with a single big-K MXU matmul (internal accumulation; only `ngroups`
        # accumulator adds, not k^3).
        acc = None
        for g in range(ngroups):
            for kdl in range(group_kd):
                din = d * stride + g * group_kd + kdl
                row = x_ref[0, din, :, :]                        # (Cin, Wext) bf16
                for kh in range(k):
                    for kw in range(k):
                        t = (kdl * k + kh) * k + kw              # static tap index
                        off = kh * wp + kw                       # static lane shift
                        xs_ref[t * cin:(t + 1) * cin, :] = row[:, off:off + hw_pad]
            part = jnp.dot(w_ref[g], xs_ref[...],
                           preferred_element_type=jnp.float32)   # (Cout, hw_pad) f32
            acc = part if acc is None else acc + part
        return acc + bias_b                                      # conv + bias, f32

    # Pass A: conv every output depth plane, store it (bf16, full-lane vst), and
    # accumulate the masked per-channel sum / sum-of-squares partials via MXU dots.
    def pass_a(d, carry):
        s1v, s2v = carry
        conv = conv_plane(d)
        o_ref[0, d, :, :] = conv.astype(o_ref.dtype)
        s1v = s1v + jnp.dot(conv, mask_col, preferred_element_type=jnp.float32)
        s2v = s2v + jnp.dot(conv * conv, mask_col, preferred_element_type=jnp.float32)
        return (s1v, s2v)

    zeros = jnp.zeros((cout, 1), jnp.float32)
    s1v, s2v = jax.lax.fori_loop(0, n_dout, pass_a, (zeros, zeros))

    s1 = jnp.sum(s1v)
    s2 = jnp.sum(s2v)
    mean = s1 * inv_count
    # Single-pass variance (clamped at 0 to guard f32 cancellation; PyTorch GN uses
    # the biased variance).
    var = jnp.maximum(s2 * inv_count - mean * mean, 0.0)
    inv = jax.lax.rsqrt(var + eps)
    scale = g_col * inv                                          # (Cout, 1)
    shift = beta_col - mean * scale                              # beta - mean*inv*gamma
    scale_b = jnp.broadcast_to(scale, (cout, hw_pad))            # hoisted broadcasts
    shift_b = jnp.broadcast_to(shift, (cout, hw_pad))

    # Pass B: normalize + folded affine (+ ReLU) in place on the VMEM-resident block.
    def pass_b(d, carry):
        v = o_ref[0, d, :, :].astype(jnp.float32)
        r = v * scale_b + shift_b
        if do_act:
            r = jnp.maximum(r, 0.0)
        o_ref[0, d, :, :] = r.astype(o_ref.dtype)
        return carry

    jax.lax.fori_loop(0, n_dout, pass_b, 0)


def conv_gn_relu3(x, weight, bias, gamma, beta, *, ksize, stride, padding,
                  do_act=True, eps=1e-5):
    """x: (N, Cin, D, H, W) f32; weight: (Cout, Cin, k, k, k) f32.
    Returns (N, Cout, Do, Ho, Wo) f32, matching the PyTorch ConvGnRelu3 module."""
    N, Cin, D, H, W = x.shape
    Cout = weight.shape[0]
    k, s, p = int(ksize), int(stride), int(padding)

    Dp, Hp, Wp = D + 2 * p, H + 2 * p, W + 2 * p
    Do = (D + 2 * p - k) // s + 1
    Ho = (H + 2 * p - k) // s + 1
    Wo = (W + 2 * p - k) // s + 1

    hw = Hp * Wp
    hw_pad = _round_up(hw, 128)                  # lane-dense output plane (full vst)
    off_max = (k - 1) * Wp + (k - 1)             # largest static tap shift
    wext = _round_up(hw_pad + off_max, 128)      # x row width incl. zero tail

    # Tap grouping: stack all k^3 taps into one MXU contraction when Cin*k^3 fits the
    # per-generation target K, otherwise group per kd plane (K = Cin*k^2).
    target_k = _mxu_target_k()
    group_kd = k if Cin * k * k * k <= target_k else 1
    assert k % group_kd == 0
    ngroups = k // group_kd
    kg = group_kd * k * k * Cin

    # ---- kernel inputs: ~1x of x in bf16, no im2col blowup --------------------------
    xp = jnp.pad(x, ((0, 0), (0, 0), (p, p), (p, p), (p, p)))
    xp = jnp.transpose(xp, (0, 2, 1, 3, 4)).reshape(N, Dp, Cin, hw)
    xp = jnp.pad(xp, ((0, 0), (0, 0), (0, 0), (0, wext - hw))).astype(jnp.bfloat16)

    # Weights packed as (ngroups, Cout, Kg), K ordered (kd_local, kh, kw, Cin) to
    # match the in-kernel K-stacked scratch layout.
    wt = jnp.transpose(weight, (0, 2, 3, 4, 1)).reshape(Cout, ngroups, kg)
    w_packed = jnp.transpose(wt, (1, 0, 2)).astype(jnp.bfloat16)

    abc = jnp.stack([bias, gamma, beta]).reshape(3, Cout, 1).astype(jnp.float32)

    # Plane-validity mask as a column vector -> GN statistics via MXU dot.
    hh = jnp.arange(Hp)
    ww = jnp.arange(Wp)
    vh = (hh % s == 0) & (hh < s * Ho)
    vw = (ww % s == 0) & (ww < s * Wo)
    mask = (vh[:, None] & vw[None, :]).reshape(hw).astype(jnp.float32)
    mask = jnp.pad(mask, (0, hw_pad - hw)).reshape(hw_pad, 1)

    inv_count = 1.0 / float(Do * Ho * Wo * Cout)

    kernel = functools.partial(
        _conv_gn_relu_kernel,
        ksize=k, stride=s, group_kd=group_kd, n_dout=Do, wp=Wp,
        eps=float(eps), do_act=bool(do_act), inv_count=inv_count)

    # VMEM budget: double-buffered blocks + K-stacked scratch, clamped to the chip's
    # physical VMEM (minus headroom) — never request > capacity on v7x's 64 MiB.
    x_blk = Dp * Cin * wext * 2                               # bf16
    o_blk = Do * Cout * hw_pad * 2                            # bf16
    w_blk = ngroups * _round_up(Cout, 16) * _round_up(kg, 128) * 2
    small = 3 * _round_up(Cout, 8) * 128 * 4 + _round_up(hw_pad, 8) * 128 * 4
    xs_scr = _round_up(kg, 16) * hw_pad * 2
    need = 2 * (x_blk + o_blk + w_blk + small) + xs_scr
    cap = _vmem_capacity_bytes()
    vmem_limit = int(min(max(need + (8 << 20), 32 << 20), cap - (4 << 20)))

    out = pl.pallas_call(
        kernel,
        out_shape=jax.ShapeDtypeStruct((N, Do, Cout, hw_pad), jnp.bfloat16),
        grid_spec=pltpu.PrefetchScalarGridSpec(
            num_scalar_prefetch=0,
            grid=(N,),
            in_specs=[
                pl.BlockSpec((1, Dp, Cin, wext), lambda n: (n, 0, 0, 0)),
                pl.BlockSpec((ngroups, Cout, kg), lambda n: (0, 0, 0)),
                pl.BlockSpec((3, Cout, 1), lambda n: (0, 0, 0)),
                pl.BlockSpec((hw_pad, 1), lambda n: (0, 0)),
            ],
            out_specs=pl.BlockSpec((1, Do, Cout, hw_pad), lambda n: (n, 0, 0, 0)),
            scratch_shapes=[pltpu.VMEM((kg, hw_pad), jnp.bfloat16)],
        ),
        compiler_params=pltpu.CompilerParams(
            dimension_semantics=("parallel",),
            vmem_limit_bytes=vmem_limit,
        ),
    )(xp, w_packed, abc, mask)

    # Crop the padded lanes / dense plane, stride-subsample, permute to NCDHW, upcast.
    out = out[..., :hw].reshape(N, Do, Cout, Hp, Wp)
    out = out[:, :, :, 0:s * Ho:s, 0:s * Wo:s]
    out = jnp.transpose(out, (0, 2, 1, 3, 4)).astype(jnp.float32)
    return out


def _reference(x, weight, bias, gamma, beta, *, ksize, stride, padding,
               do_act=True, eps=1e-5, matmul_dtype=jnp.bfloat16):
    """Pure-JAX reference. matmul_dtype=bf16 mirrors the kernel's MXU operand dtype;
    matmul_dtype=f32 is the exact PyTorch-f32 semantics (loose sanity check)."""
    conv = jax.lax.conv_general_dilated(
        x.astype(matmul_dtype), weight.astype(matmul_dtype),
        window_strides=(stride,) * 3,
        padding=[(padding, padding)] * 3,
        dimension_numbers=("NCDHW", "OIDHW", "NCDHW"),
        preferred_element_type=jnp.float32,
    ) + bias.reshape(1, -1, 1, 1, 1)
    mean = jnp.mean(conv, axis=(1, 2, 3, 4), keepdims=True)
    var = jnp.mean((conv - mean) ** 2, axis=(1, 2, 3, 4), keepdims=True)
    out = (conv - mean) * jax.lax.rsqrt(var + eps)
    out = out * gamma.reshape(1, -1, 1, 1, 1) + beta.reshape(1, -1, 1, 1, 1)
    if do_act:
        out = jnp.maximum(out, 0.0)
    return out


if __name__ == "__main__":
    key = jax.random.PRNGKey(0)

    # Configs: (N, Cin, Cout, D, stride). The third config makes Cin*k^3 exceed the
    # MXU K target so the per-kd tap-group path (ngroups > 1) is exercised too.
    configs = [
        (2, 4, 8, 8, 1),
        (2, 4, 8, 8, 2),
        (2, 16, 8, 6, 1),
    ]

    for (N, Cin, Cout, D, stride) in configs:
        H = W = D
        ksize, padding = 3, 1

        key, kx, kw, kb, kg, kbeta = jax.random.split(key, 6)
        x = jax.random.normal(kx, (N, Cin, D, H, W), dtype=jnp.float32)
        weight = 0.1 * jax.random.normal(kw, (Cout, Cin, ksize, ksize, ksize),
                                         dtype=jnp.float32)
        bias = 0.05 * jax.random.normal(kb, (Cout,), dtype=jnp.float32)
        gamma = 1.0 + 0.1 * jax.random.normal(kg, (Cout,), dtype=jnp.float32)
        beta = 0.05 * jax.random.normal(kbeta, (Cout,), dtype=jnp.float32)

        out = conv_gn_relu3(x, weight, bias, gamma, beta,
                            ksize=ksize, stride=stride, padding=padding, do_act=True)
        out = jax.block_until_ready(out)

        Do = (D + 2 * padding - ksize) // stride + 1
        assert out.shape == (N, Cout, Do, Do, Do), out.shape

        # Check vs. a reference using the same bf16 MXU operands / f32 accumulation
        # (remaining delta: bf16 storage of the conv intermediate + output).
        ref_bf16 = _reference(x, weight, bias, gamma, beta, ksize=ksize,
                              stride=stride, padding=padding, do_act=True)
        err = float(jnp.max(jnp.abs(out - ref_bf16)))
        assert err < 8e-2, (N, Cin, Cout, D, stride, err)

        # Loose sanity check vs. the exact f32 module semantics.
        ref_f32 = _reference(x, weight, bias, gamma, beta, ksize=ksize,
                             stride=stride, padding=padding, do_act=True,
                             matmul_dtype=jnp.float32)
        err32 = float(jnp.max(jnp.abs(out - ref_f32)))
        assert err32 < 2.5e-1, (N, Cin, Cout, D, stride, err32)

    print("KERNEL_OK")
</pallas_src>

<mosaic_0001>
module attributes {stable_mosaic.version = 11 : i64} {
  func.func @_conv_gn_relu_kernel(%arg0: i32, %arg1: memref<1x10x4x256xbf16, #tpu.memory_space<vmem>>, %arg2: memref<1x8x108xbf16, #tpu.memory_space<vmem>>, %arg3: memref<3x8x1xf32, #tpu.memory_space<vmem>>, %arg4: memref<128x1xf32, #tpu.memory_space<vmem>>, %arg5: memref<1x8x8x128xbf16, #tpu.memory_space<vmem>>, %arg6: memref<108x128xbf16, #tpu.memory_space<vmem>>) attributes {dimension_semantics = [#tpu.dimension_semantics<parallel>], iteration_bounds = array<i64: 2>, scalar_prefetch = 0 : i64, scratch_operands = 1 : i64, tpu.core_type = #tpu.core_type<tc>, window_params = [{transform_indices = @transform_0, window_bounds = array<i64: 1, 10, 4, 256>}, {pipeline_mode = #tpu.pipeline_mode<synchronous>, transform_indices = @transform_1, window_bounds = array<i64: 1, 8, 108>}, {pipeline_mode = #tpu.pipeline_mode<synchronous>, transform_indices = @transform_2, window_bounds = array<i64: 3, 8, 1>}, {pipeline_mode = #tpu.pipeline_mode<synchronous>, transform_indices = @transform_3, window_bounds = array<i64: 128, 1>}, {transform_indices = @transform_4, window_bounds = array<i64: 1, 8, 8, 128>}]} {
    %c0 = arith.constant 0 : index
    %c0_0 = arith.constant 0 : index
    %c0_1 = arith.constant 0 : index
    %0 = vector.load %arg3[%c0, %c0_0, %c0_1] : memref<3x8x1xf32, #tpu.memory_space<vmem>>, vector<1x8x1xf32>
    %1 = vector.shape_cast %0 : vector<1x8x1xf32> to vector<8x1xf32>
    %c1 = arith.constant 1 : index
    %c0_2 = arith.constant 0 : index
    %c0_3 = arith.constant 0 : index
    %2 = vector.load %arg3[%c1, %c0_2, %c0_3] : memref<3x8x1xf32, #tpu.memory_space<vmem>>, vector<1x8x1xf32>
    %3 = vector.shape_cast %2 : vector<1x8x1xf32> to vector<8x1xf32>
    %c2 = arith.constant 2 : index
    %c0_4 = arith.constant 0 : index
    %c0_5 = arith.constant 0 : index
    %4 = vector.load %arg3[%c2, %c0_4, %c0_5] : memref<3x8x1xf32, #tpu.memory_space<vmem>>, vector<1x8x1xf32>
    %5 = vector.shape_cast %4 : vector<1x8x1xf32> to vector<8x1xf32>
    %c0_6 = arith.constant 0 : index
    %c0_7 = arith.constant 0 : index
    %6 = vector.load %arg4[%c0_6, %c0_7] : memref<128x1xf32, #tpu.memory_space<vmem>>, vector<128x1xf32>
    %7 = vector.shape_cast %1 : vector<8x1xf32> to vector<8x1xf32>
    %8 = vector.broadcast %7 : vector<8x1xf32> to vector<8x128xf32>
    %cst = arith.constant 0.000000e+00 : f32
    %9 = vector.broadcast %cst : f32 to vector<8x1xf32>
    %c0_i32 = arith.constant 0 : i32
    %c8_i32 = arith.constant 8 : i32
    %10 = arith.addi %c0_i32, %c8_i32 : i32
    %c1_i32 = arith.constant 1 : i32
    %11:2 = scf.for %arg7 = %c0_i32 to %10 step %c1_i32 iter_args(%arg8 = %9, %arg9 = %9) -> (vector<8x1xf32>, vector<8x1xf32>)  : i32 {
      %c1_i32_19 = arith.constant 1 : i32
      %37 = arith.muli %arg7, %c1_i32_19 : i32
      %c0_i32_20 = arith.constant 0 : i32
      %38 = arith.addi %37, %c0_i32_20 : i32
      %c0_i32_21 = arith.constant 0 : i32
      %39 = arith.addi %38, %c0_i32_21 : i32
      %c0_22 = arith.constant 0 : index
      %40 = arith.index_cast %39 : i32 to index
      %c0_23 = arith.constant 0 : index
      %c0_24 = arith.constant 0 : index
      %41 = vector.load %arg1[%c0_22, %40, %c0_23, %c0_24] : memref<1x10x4x256xbf16, #tpu.memory_space<vmem>>, vector<1x1x4x256xbf16>
      %42 = vector.shape_cast %41 : vector<1x1x4x256xbf16> to vector<4x256xbf16>
      %43 = vector.extract_strided_slice %42 {offsets = [0, 0], sizes = [4, 128], strides = [1, 1]} : vector<4x256xbf16> to vector<4x128xbf16>
      %c0_25 = arith.constant 0 : index
      %c0_26 = arith.constant 0 : index
      %44 = vector.load %arg6[%c0_25, %c0_26] : memref<108x128xbf16, #tpu.memory_space<vmem>>, vector<4x128xbf16>
      tpu.vector_store %arg6[%c0_25, %c0_26], %43 {strides = array<i32>} : memref<108x128xbf16, #tpu.memory_space<vmem>>, vector<4x128xbf16>,
      %45 = vector.extract_strided_slice %42 {offsets = [0, 1], sizes = [4, 128], strides = [1, 1]} : vector<4x256xbf16> to vector<4x128xbf16>
      %c4 = arith.constant 4 : index
      %c0_27 = arith.constant 0 : index
      %46 = vector.load %arg6[%c4, %c0_27] : memref<108x128xbf16, #tpu.memory_space<vmem>>, vector<4x128xbf16>
      tpu.vector_store %arg6[%c4, %c0_27], %45 {strides = array<i32>} : memref<108x128xbf16, #tpu.memory_space<vmem>>, vector<4x128xbf16>,
      %47 = vector.extract_strided_slice %42 {offsets = [0, 2], sizes = [4, 128], strides = [1, 1]} : vector<4x256xbf16> to vector<4x128xbf16>
      %c8 = arith.constant 8 : index
      %c0_28 = arith.constant 0 : index
      %48 = vector.load %arg6[%c8, %c0_28] : memref<108x128xbf16, #tpu.memory_space<vmem>>, vector<4x128xbf16>
      tpu.vector_store %arg6[%c8, %c0_28], %47 {strides = array<i32>} : memref<108x128xbf16, #tpu.memory_space<vmem>>, vector<4x128xbf16>,
      %49 = vector.extract_strided_slice %42 {offsets = [0, 10], sizes = [4, 128], strides = [1, 1]} : vector<4x256xbf16> to vector<4x128xbf16>
      %c12 = arith.constant 12 : index
      %c0_29 = arith.constant 0 : index
      %50 = vector.load %arg6[%c12, %c0_29] : memref<108x128xbf16, #tpu.memory_space<vmem>>, vector<4x128xbf16>
      tpu.vector_store %arg6[%c12, %c0_29], %49 {strides = array<i32>} : memref<108x128xbf16, #tpu.memory_space<vmem>>, vector<4x128xbf16>,
      %51 = vector.extract_strided_slice %42 {offsets = [0, 11], sizes = [4, 128], strides = [1, 1]} : vector<4x256xbf16> to vector<4x128xbf16>
      %c16 = arith.constant 16 : index
      %c0_30 = arith.constant 0 : index
      %52 = vector.load %arg6[%c16, %c0_30] : memref<108x128xbf16, #tpu.memory_space<vmem>>, vector<4x128xbf16>
      tpu.vector_store %arg6[%c16, %c0_30], %51 {strides = array<i32>} : memref<108x128xbf16, #tpu.memory_space<vmem>>, vector<4x128xbf16>,
      %53 = vector.extract_strided_slice %42 {offsets = [0, 12], sizes = [4, 128], strides = [1, 1]} : vector<4x256xbf16> to vector<4x128xbf16>
      %c20 = arith.constant 20 : index
      %c0_31 = arith.constant 0 : index
      %54 = vector.load %arg6[%c20, %c0_31] : memref<108x128xbf16, #tpu.memory_space<vmem>>, vector<4x128xbf16>
      tpu.vector_store %arg6[%c20, %c0_31], %53 {strides = array<i32>} : memref<108x128xbf16, #tpu.memory_space<vmem>>, vector<4x128xbf16>,
      %55 = vector.extract_strided_slice %42 {offsets = [0, 20], sizes = [4, 128], strides = [1, 1]} : vector<4x256xbf16> to vector<4x128xbf16>
      %c24 = arith.constant 24 : index
      %c0_32 = arith.constant 0 : index
      %56 = vector.load %arg6[%c24, %c0_32] : memref<108x128xbf16, #tpu.memory_space<vmem>>, vector<4x128xbf16>
      tpu.vector_store %arg6[%c24, %c0_32], %55 {strides = array<i32>} : memref<108x128xbf16, #tpu.memory_space<vmem>>, vector<4x128xbf16>,
      %57 = vector.extract_strided_slice %42 {offsets = [0, 21], sizes = [4, 128], strides = [1, 1]} : vector<4x256xbf16> to vector<4x128xbf16>
      %c28 = arith.constant 28 : index
      %c0_33 = arith.constant 0 : index
      %58 = vector.load %arg6[%c28, %c0_33] : memref<108x128xbf16, #tpu.memory_space<vmem>>, vector<4x128xbf16>
      tpu.vector_store %arg6[%c28, %c0_33], %57 {strides = array<i32>} : memref<108x128xbf16, #tpu.memory_space<vmem>>, vector<4x128xbf16>,
      %59 = vector.extract_strided_slice %42 {offsets = [0, 22], sizes = [4, 128], strides = [1, 1]} : vector<4x256xbf16> to vector<4x128xbf16>
      %c32 = arith.constant 32 : index
      %c0_34 = arith.constant 0 : index
      %60 = vector.load %arg6[%c32, %c0_34] : memref<108x128xbf16, #tpu.memory_space<vmem>>, vector<4x128xbf16>
      tpu.vector_store %arg6[%c32, %c0_34], %59 {strides = array<i32>} : memref<108x128xbf16, #tpu.memory_space<vmem>>, vector<4x128xbf16>,
      %c1_i32_35 = arith.constant 1 : i32
      %61 = arith.muli %arg7, %c1_i32_35 : i32
      %c0_i32_36 = arith.constant 0 : i32
      %62 = arith.addi %61, %c0_i32_36 : i32
      %c1_i32_37 = arith.constant 1 : i32
      %63 = arith.addi %62, %c1_i32_37 : i32
      %c0_38 = arith.constant 0 : index
      %64 = arith.index_cast %63 : i32 to index
      %c0_39 = arith.constant 0 : index
      %c0_40 = arith.constant 0 : index
      %65 = vector.load %arg1[%c0_38, %64, %c0_39, %c0_40] : memref<1x10x4x256xbf16, #tpu.memory_space<vmem>>, vector<1x1x4x256xbf16>
      %66 = vector.shape_cast %65 : vector<1x1x4x256xbf16> to vector<4x256xbf16>
      %67 = vector.extract_strided_slice %66 {offsets = [0, 0], sizes = [4, 128], strides = [1, 1]} : vector<4x256xbf16> to vector<4x128xbf16>
      %c36 = arith.constant 36 : index
      %c0_41 = arith.constant 0 : index
      %68 = vector.load %arg6[%c36, %c0_41] : memref<108x128xbf16, #tpu.memory_space<vmem>>, vector<4x128xbf16>
      tpu.vector_store %arg6[%c36, %c0_41], %67 {strides = array<i32>} : memref<108x128xbf16, #tpu.memory_space<vmem>>, vector<4x128xbf16>,
      %69 = vector.extract_strided_slice %66 {offsets = [0, 1], sizes = [4, 128], strides = [1, 1]} : vector<4x256xbf16> to vector<4x128xbf16>
      %c40 = arith.constant 40 : index
      %c0_42 = arith.constant 0 : index
      %70 = vector.load %arg6[%c40, %c0_42] : memref<108x128xbf16, #tpu.memory_space<vmem>>, vector<4x128xbf16>
      tpu.vector_store %arg6[%c40, %c0_42], %69 {strides = array<i32>} : memref<108x128xbf16, #tpu.memory_space<vmem>>, vector<4x128xbf16>,
      %71 = vector.extract_strided_slice %66 {offsets = [0, 2], sizes = [4, 128], strides = [1, 1]} : vector<4x256xbf16> to vector<4x128xbf16>
      %c44 = arith.constant 44 : index
      %c0_43 = arith.constant 0 : index
      %72 = vector.load %arg6[%c44, %c0_43] : memref<108x128xbf16, #tpu.memory_space<vmem>>, vector<4x128xbf16>
      tpu.vector_store %arg6[%c44, %c0_43], %71 {strides = array<i32>} : memref<108x128xbf16, #tpu.memory_space<vmem>>, vector<4x128xbf16>,
      %73 = vector.extract_strided_slice %66 {offsets = [0, 10], sizes = [4, 128], strides = [1, 1]} : vector<4x256xbf16> to vector<4x128xbf16>
      %c48 = arith.constant 48 : index
      %c0_44 = arith.constant 0 : index
      %74 = vector.load %arg6[%c48, %c0_44] : memref<108x128xbf16, #tpu.memory_space<vmem>>, vector<4x128xbf16>
      tpu.vector_store %arg6[%c48, %c0_44], %73 {strides = array<i32>} : memref<108x128xbf16, #tpu.memory_space<vmem>>, vector<4x128xbf16>,
      %75 = vector.extract_strided_slice %66 {offsets = [0, 11], sizes = [4, 128], strides = [1, 1]} : vector<4x256xbf16> to vector<4x128xbf16>
      %c52 = arith.constant 52 : index
      %c0_45 = arith.constant 0 : index
      %76 = vector.load %arg6[%c52, %c0_45] : memref<108x128xbf16, #tpu.memory_space<vmem>>, vector<4x128xbf16>
      tpu.vector_store %arg6[%c52, %c0_45], %75 {strides = array<i32>} : memref<108x128xbf16, #tpu.memory_space<vmem>>, vector<4x128xbf16>,
      %77 = vector.extract_strided_slice %66 {offsets = [0, 12], sizes = [4, 128], strides = [1, 1]} : vector<4x256xbf16> to vector<4x128xbf16>
      %c56 = arith.constant 56 : index
      %c0_46 = arith.constant 0 : index
      %78 = vector.load %arg6[%c56, %c0_46] : memref<108x128xbf16, #tpu.memory_space<vmem>>, vector<4x128xbf16>
      tpu.vector_store %arg6[%c56, %c0_46], %77 {strides = array<i32>} : memref<108x128xbf16, #tpu.memory_space<vmem>>, vector<4x128xbf16>,
      %79 = vector.extract_strided_slice %66 {offsets = [0, 20], sizes = [4, 128], strides = [1, 1]} : vector<4x256xbf16> to vector<4x128xbf16>
      %c60 = arith.constant 60 : index
      %c0_47 = arith.constant 0 : index
      %80 = vector.load %arg6[%c60, %c0_47] : memref<108x128xbf16, #tpu.memory_space<vmem>>, vector<4x128xbf16>
      tpu.vector_store %arg6[%c60, %c0_47], %79 {strides = array<i32>} : memref<108x128xbf16, #tpu.memory_space<vmem>>, vector<4x128xbf16>,
      %81 = vector.extract_strided_slice %66 {offsets = [0, 21], sizes = [4, 128], strides = [1, 1]} : vector<4x256xbf16> to vector<4x128xbf16>
      %c64 = arith.constant 64 : index
      %c0_48 = arith.constant 0 : index
      %82 = vector.load %arg6[%c64, %c0_48] : memref<108x128xbf16, #tpu.memory_space<vmem>>, vector<4x128xbf16>
      tpu.vector_store %arg6[%c64, %c0_48], %81 {strides = array<i32>} : memref<108x128xbf16, #tpu.memory_space<vmem>>, vector<4x128xbf16>,
      %83 = vector.extract_strided_slice %66 {offsets = [0, 22], sizes = [4, 128], strides = [1, 1]} : vector<4x256xbf16> to vector<4x128xbf16>
      %c68 = arith.constant 68 : index
      %c0_49 = arith.constant 0 : index
      %84 = vector.load %arg6[%c68, %c0_49] : memref<108x128xbf16, #tpu.memory_space<vmem>>, vector<4x128xbf16>
      tpu.vector_store %arg6[%c68, %c0_49], %83 {strides = array<i32>} : memref<108x128xbf16, #tpu.memory_space<vmem>>, vector<4x128xbf16>,
      %c1_i32_50 = arith.constant 1 : i32
      %85 = arith.muli %arg7, %c1_i32_50 : i32
      %c0_i32_51 = arith.constant 0 : i32
      %86 = arith.addi %85, %c0_i32_51 : i32
      %c2_i32 = arith.constant 2 : i32
      %87 = arith.addi %86, %c2_i32 : i32
      %c0_52 = arith.constant 0 : index
      %88 = arith.index_cast %87 : i32 to index
      %c0_53 = arith.constant 0 : index
      %c0_54 = arith.constant 0 : index
      %89 = vector.load %arg1[%c0_52, %88, %c0_53, %c0_54] : memref<1x10x4x256xbf16, #tpu.memory_space<vmem>>, vector<1x1x4x256xbf16>
      %90 = vector.shape_cast %89 : vector<1x1x4x256xbf16> to vector<4x256xbf16>
      %91 = vector.extract_strided_slice %90 {offsets = [0, 0], sizes = [4, 128], strides = [1, 1]} : vector<4x256xbf16> to vector<4x128xbf16>
      %c72 = arith.constant 72 : index
      %c0_55 = arith.constant 0 : index
      %92 = vector.load %arg6[%c72, %c0_55] : memref<108x128xbf16, #tpu.memory_space<vmem>>, vector<4x128xbf16>
      tpu.vector_store %arg6[%c72, %c0_55], %91 {strides = array<i32>} : memref<108x128xbf16, #tpu.memory_space<vmem>>, vector<4x128xbf16>,
      %93 = vector.extract_strided_slice %90 {offsets = [0, 1], sizes = [4, 128], strides = [1, 1]} : vector<4x256xbf16> to vector<4x128xbf16>
      %c76 = arith.constant 76 : index
      %c0_56 = arith.constant 0 : index
      %94 = vector.load %arg6[%c76, %c0_56] : memref<108x128xbf16, #tpu.memory_space<vmem>>, vector<4x128xbf16>
      tpu.vector_store %arg6[%c76, %c0_56], %93 {strides = array<i32>} : memref<108x128xbf16, #tpu.memory_space<vmem>>, vector<4x128xbf16>,
      %95 = vector.extract_strided_slice %90 {offsets = [0, 2], sizes = [4, 128], strides = [1, 1]} : vector<4x256xbf16> to vector<4x128xbf16>
      %c80 = arith.constant 80 : index
      %c0_57 = arith.constant 0 : index
      %96 = vector.load %arg6[%c80, %c0_57] : memref<108x128xbf16, #tpu.memory_space<vmem>>, vector<4x128xbf16>
      tpu.vector_store %arg6[%c80, %c0_57], %95 {strides = array<i32>} : memref<108x128xbf16, #tpu.memory_space<vmem>>, vector<4x128xbf16>,
      %97 = vector.extract_strided_slice %90 {offsets = [0, 10], sizes = [4, 128], strides = [1, 1]} : vector<4x256xbf16> to vector<4x128xbf16>
      %c84 = arith.constant 84 : index
      %c0_58 = arith.constant 0 : index
      %98 = vector.load %arg6[%c84, %c0_58] : memref<108x128xbf16, #tpu.memory_space<vmem>>, vector<4x128xbf16>
      tpu.vector_store %arg6[%c84, %c0_58], %97 {strides = array<i32>} : memref<108x128xbf16, #tpu.memory_space<vmem>>, vector<4x128xbf16>,
      %99 = vector.extract_strided_slice %90 {offsets = [0, 11], sizes = [4, 128], strides = [1, 1]} : vector<4x256xbf16> to vector<4x128xbf16>
      %c88 = arith.constant 88 : index
      %c0_59 = arith.constant 0 : index
      %100 = vector.load %arg6[%c88, %c0_59] : memref<108x128xbf16, #tpu.memory_space<vmem>>, vector<4x128xbf16>
      tpu.vector_store %arg6[%c88, %c0_59], %99 {strides = array<i32>} : memref<108x128xbf16, #tpu.memory_space<vmem>>, vector<4x128xbf16>,
      %101 = vector.extract_strided_slice %90 {offsets = [0, 12], sizes = [4, 128], strides = [1, 1]} : vector<4x256xbf16> to vector<4x128xbf16>
      %c92 = arith.constant 92 : index
      %c0_60 = arith.constant 0 : index
      %102 = vector.load %arg6[%c92, %c0_60] : memref<108x128xbf16, #tpu.memory_space<vmem>>, vector<4x128xbf16>
      tpu.vector_store %arg6[%c92, %c0_60], %101 {strides = array<i32>} : memref<108x128xbf16, #tpu.memory_space<vmem>>, vector<4x128xbf16>,
      %103 = vector.extract_strided_slice %90 {offsets = [0, 20], sizes = [4, 128], strides = [1, 1]} : vector<4x256xbf16> to vector<4x128xbf16>
      %c96 = arith.constant 96 : index
      %c0_61 = arith.constant 0 : index
      %104 = vector.load %arg6[%c96, %c0_61] : memref<108x128xbf16, #tpu.memory_space<vmem>>, vector<4x128xbf16>
      tpu.vector_store %arg6[%c96, %c0_61], %103 {strides = array<i32>} : memref<108x128xbf16, #tpu.memory_space<vmem>>, vector<4x128xbf16>,
      %105 = vector.extract_strided_slice %90 {offsets = [0, 21], sizes = [4, 128], strides = [1, 1]} : vector<4x256xbf16> to vector<4x128xbf16>
      %c100 = arith.constant 100 : index
      %c0_62 = arith.constant 0 : index
      %106 = vector.load %arg6[%c100, %c0_62] : memref<108x128xbf16, #tpu.memory_space<vmem>>, vector<4x128xbf16>
      tpu.vector_store %arg6[%c100, %c0_62], %105 {strides = array<i32>} : memref<108x128xbf16, #tpu.memory_space<vmem>>, vector<4x128xbf16>,
      %107 = vector.extract_strided_slice %90 {offsets = [0, 22], sizes = [4, 128], strides = [1, 1]} : vector<4x256xbf16> to vector<4x128xbf16>
      %c104 = arith.constant 104 : index
      %c0_63 = arith.constant 0 : index
      %108 = vector.load %arg6[%c104, %c0_63] : memref<108x128xbf16, #tpu.memory_space<vmem>>, vector<4x128xbf16>
      tpu.vector_store %arg6[%c104, %c0_63], %107 {strides = array<i32>} : memref<108x128xbf16, #tpu.memory_space<vmem>>, vector<4x128xbf16>,
      %c0_64 = arith.constant 0 : index
      %c0_65 = arith.constant 0 : index
      %c0_66 = arith.constant 0 : index
      %109 = vector.load %arg2[%c0_64, %c0_65, %c0_66] : memref<1x8x108xbf16, #tpu.memory_space<vmem>>, vector<1x8x108xbf16>
      %110 = vector.shape_cast %109 : vector<1x8x108xbf16> to vector<8x108xbf16>
      %c0_67 = arith.constant 0 : index
      %c0_68 = arith.constant 0 : index
      %111 = vector.load %arg6[%c0_67, %c0_68] : memref<108x128xbf16, #tpu.memory_space<vmem>>, vector<108x128xbf16>
      %cst_69 = arith.constant dense<0.000000e+00> : vector<8x128xf32>
      %112 = tpu.matmul %110, %111, %cst_69 {dimension_numbers = #tpu.dot_dimension_numbers<[1], [0], [0], [1], [0, 0, 1, 1], [], []>} : vector<8x108xbf16>, vector<108x128xbf16>, vector<8x128xf32> -> vector<8x128xf32>
      %113 = arith.addf %112, %8 : vector<8x128xf32>
      %114 = arith.truncf %113 : vector<8x128xf32> to vector<8x128xbf16>
      %c0_70 = arith.constant 0 : index
      %115 = arith.index_cast %arg7 : i32 to index
      %c0_71 = arith.constant 0 : index
      %c0_72 = arith.constant 0 : index
      %116 = vector.load %arg5[%c0_70, %115, %c0_71, %c0_72] : memref<1x8x8x128xbf16, #tpu.memory_space<vmem>>, vector<1x1x8x128xbf16>
      %117 = vector.shape_cast %116 : vector<1x1x8x128xbf16> to vector<8x128xbf16>
      %118 = vector.shape_cast %114 : vector<8x128xbf16> to vector<1x1x8x128xbf16>
      tpu.vector_store %arg5[%c0_70, %115, %c0_71, %c0_72], %118 {strides = array<i32>} : memref<1x8x8x128xbf16, #tpu.memory_space<vmem>>, vector<1x1x8x128xbf16>,
      %cst_73 = arith.constant dense<0.000000e+00> : vector<8x1xf32>
      %119 = tpu.matmul %113, %6, %cst_73 {dimension_numbers = #tpu.dot_dimension_numbers<[1], [0], [0], [1], [0, 0, 1, 1], [], []>} : vector<8x128xf32>, vector<128x1xf32>, vector<8x1xf32> -> vector<8x1xf32>
      %120 = arith.addf %arg8, %119 : vector<8x1xf32>
      %121 = arith.mulf %113, %113 : vector<8x128xf32>
      %cst_74 = arith.constant dense<0.000000e+00> : vector<8x1xf32>
      %122 = tpu.matmul %121, %6, %cst_74 {dimension_numbers = #tpu.dot_dimension_numbers<[1], [0], [0], [1], [0, 0, 1, 1], [], []>} : vector<8x128xf32>, vector<128x1xf32>, vector<8x1xf32> -> vector<8x1xf32>
      %123 = arith.addf %arg9, %122 : vector<8x1xf32>
      scf.yield %120, %123 : vector<8x1xf32>, vector<8x1xf32>
    }
    %c8_i32_8 = arith.constant 8 : i32
    %12 = vector.shape_cast %11#0 : vector<8x1xf32> to vector<1x8x1xf32>
    %cst_9 = arith.constant dense<0.000000e+00> : vector<1xf32>
    %13 = vector.multi_reduction <add>, %12, %cst_9 [1, 2] : vector<1x8x1xf32> to vector<1xf32>
    %14 = vector.shape_cast %13 : vector<1xf32> to vector<1x1x1xf32>
    %15 = vector.extract %14[0, 0, 0] : f32 from vector<1x1x1xf32>
    %16 = vector.shape_cast %11#1 : vector<8x1xf32> to vector<1x8x1xf32>
    %cst_10 = arith.constant dense<0.000000e+00> : vector<1xf32>
    %17 = vector.multi_reduction <add>, %16, %cst_10 [1, 2] : vector<1x8x1xf32> to vector<1xf32>
    %18 = vector.shape_cast %17 : vector<1xf32> to vector<1x1x1xf32>
    %19 = vector.extract %18[0, 0, 0] : f32 from vector<1x1x1xf32>
    %cst_11 = arith.constant 2.44140625E-4 : f32
    %20 = arith.mulf %15, %cst_11 : f32
    %cst_12 = arith.constant 2.44140625E-4 : f32
    %21 = arith.mulf %19, %cst_12 : f32
    %22 = arith.mulf %20, %20 : f32
    %23 = arith.subf %21, %22 : f32
    %cst_13 = arith.constant 0.000000e+00 : f32
    %24 = arith.maximumf %23, %cst_13 : f32
    %cst_14 = arith.constant 9.99999974E-6 : f32
    %25 = arith.addf %24, %cst_14 : f32
    %26 = math.rsqrt %25 : f32
    %27 = vector.broadcast %26 : f32 to vector<8x1xf32>
    %28 = arith.mulf %3, %27 : vector<8x1xf32>
    %29 = vector.broadcast %20 : f32 to vector<8x1xf32>
    %30 = arith.mulf %29, %28 : vector<8x1xf32>
    %31 = arith.subf %5, %30 : vector<8x1xf32>
    %32 = vector.shape_cast %28 : vector<8x1xf32> to vector<8x1xf32>
    %33 = vector.broadcast %32 : vector<8x1xf32> to vector<8x128xf32>
    %34 = vector.shape_cast %31 : vector<8x1xf32> to vector<8x1xf32>
    %35 = vector.broadcast %34 : vector<8x1xf32> to vector<8x128xf32>
    %c0_i32_15 = arith.constant 0 : i32
    %c8_i32_16 = arith.constant 8 : i32
    %36 = arith.addi %c0_i32_15, %c8_i32_16 : i32
    %c1_i32_17 = arith.constant 1 : i32
    scf.for %arg7 = %c0_i32_15 to %36 step %c1_i32_17  : i32 {
      %c0_19 = arith.constant 0 : index
      %37 = arith.index_cast %arg7 : i32 to index
      %c0_20 = arith.constant 0 : index
      %c0_21 = arith.constant 0 : index
      %38 = vector.load %arg5[%c0_19, %37, %c0_20, %c0_21] : memref<1x8x8x128xbf16, #tpu.memory_space<vmem>>, vector<1x1x8x128xbf16>
      %39 = vector.shape_cast %38 : vector<1x1x8x128xbf16> to vector<8x128xbf16>
      %40 = arith.extf %39 : vector<8x128xbf16> to vector<8x128xf32>
      %41 = arith.mulf %40, %33 : vector<8x128xf32>
      %42 = arith.addf %41, %35 : vector<8x128xf32>
      %cst_22 = arith.constant 0.000000e+00 : f32
      %43 = vector.broadcast %cst_22 : f32 to vector<8x128xf32>
      %44 = arith.maximumf %42, %43 : vector<8x128xf32>
      %45 = arith.truncf %44 : vector<8x128xf32> to vector<8x128xbf16>
      %c0_23 = arith.constant 0 : index
      %46 = arith.index_cast %arg7 : i32 to index
      %c0_24 = arith.constant 0 : index
      %c0_25 = arith.constant 0 : index
      %47 = vector.load %arg5[%c0_23, %46, %c0_24, %c0_25] : memref<1x8x8x128xbf16, #tpu.memory_space<vmem>>, vector<1x1x8x128xbf16>
      %48 = vector.shape_cast %47 : vector<1x1x8x128xbf16> to vector<8x128xbf16>
      %49 = vector.shape_cast %45 : vector<8x128xbf16> to vector<1x1x8x128xbf16>
      tpu.vector_store %arg5[%c0_23, %46, %c0_24, %c0_25], %49 {strides = array<i32>} : memref<1x8x8x128xbf16, #tpu.memory_space<vmem>>, vector<1x1x8x128xbf16>,
    }
    %c8_i32_18 = arith.constant 8 : i32
    return
  }
  func.func @transform_0(%arg0: i32) -> (i32, i32, i32, i32) {
    %c0_i32 = arith.constant 0 : i32
    %c0_i32_0 = arith.constant 0 : i32
    %c0_i32_1 = arith.constant 0 : i32
    %c0_i32_2 = arith.constant 0 : i32
    return %arg0, %c0_i32, %c0_i32_0, %c0_i32_1 : i32, i32, i32, i32
  }
  func.func @transform_1(%arg0: i32) -> (i32, i32, i32) {
    %c0_i32 = arith.constant 0 : i32
    %c0_i32_0 = arith.constant 0 : i32
    %c0_i32_1 = arith.constant 0 : i32
    %c0_i32_2 = arith.constant 0 : i32
    return %c0_i32, %c0_i32_0, %c0_i32_1 : i32, i32, i32
  }
  func.func @transform_2(%arg0: i32) -> (i32, i32, i32) {
    %c0_i32 = arith.constant 0 : i32
    %c0_i32_0 = arith.constant 0 : i32
    %c0_i32_1 = arith.constant 0 : i32
    %c0_i32_2 = arith.constant 0 : i32
    return %c0_i32, %c0_i32_0, %c0_i32_1 : i32, i32, i32
  }
  func.func @transform_3(%arg0: i32) -> (i32, i32) {
    %c0_i32 = arith.constant 0 : i32
    %c0_i32_0 = arith.constant 0 : i32
    %c0_i32_1 = arith.constant 0 : i32
    return %c0_i32, %c0_i32_0 : i32, i32
  }
  func.func @transform_4(%arg0: i32) -> (i32, i32, i32, i32) {
    %c0_i32 = arith.constant 0 : i32
    %c0_i32_0 = arith.constant 0 : i32
    %c0_i32_1 = arith.constant 0 : i32
    %c0_i32_2 = arith.constant 0 : i32
    return %arg0, %c0_i32, %c0_i32_0, %c0_i32_1 : i32, i32, i32, i32
  }
}

</mosaic_0001>

<bundles_post_ra>
// kernel: tpu_custom_call.1
= control target key start
LH: loop header
LB: loop body
LE: loop exit
PB: predicated region body
PF: predicated region fallthrough
CT: control target
= control target key end

     0   :  { %9 = vsyncpa [#allocation4], 0  ;;  %s1650_s0 = inlined_call_operand.vmem [shape: bf16[2,10,4,256], index: 0, kind: input, shape index: {}]   ;;  %s1651_s1 = inlined_call_operand.vmem [shape: bf16[1,8,108], index: 1, kind: input, shape index: {}]   ;;  %s1652_s2 = inlined_call_operand.vmem [shape: f32[3,8,1], index: 2, kind: input, shape index: {}]   ;;  %s1653_s3 = inlined_call_operand.vmem [shape: f32[128,1], index: 3, kind: input, shape index: {}]   ;;  %s1654_s4 = inlined_call_operand.hbm [shape: bf16[2,8,8,128], index: 4, kind: output, shape index: {}]  }
   0x1   :  { %11 = vsyncpa [#allocation4 + $0x1], 0  ;;  %s1269_s15 = smov 0   ;;  %s1271_s16 = smov 0  }
   0x2   :  { %s1273_s17 = smov 0   ;;  %s1275_s18 = smov 0  }
   0x3 LB: > { %s1290_s19 = sadd.s32 4294967295, %s1210_s18   ;;  %s864_s20 = sadd.s32 4294967294, %s1210_s18   ;;  %s1210_s18 = sphi %s1275_s18, %s1662_s18   ;;  %s1206_s17 = sphi %s1273_s17, %s1661_s17   ;;  %s1202_s16 = sphi %s1271_s16, %s1660_s16   ;;  %s1198_s15 = sphi %s1269_s15, %s1659_s15  }
   0x4   : > { %s1294_s21 = sadd.s32 1, %s1210_s18   ;;  %s113_s22 = sadd.s32 1, %s1206_s17 }
   0x5   : > { %s110_s23 = ssub.s32 %s1210_s18, %s1294_s21  ;;  %p123_p0 = scmp.ne.s32.totalorder %s1206_s17, %s1202_s16 }
   0x6   : > { %p111_p1 = scmp.eq.s32.totalorder %s110_s23, 0  ;;  %p124_p2 = scmp.eq.s32.totalorder %s1290_s19, 1 }
   0x7   : > { %p129_p3 = scmp.ne.s32.totalorder %s1202_s16, %s1198_s15  ;;  %p130_p4 = scmp.eq.s32.totalorder %s864_s20, 1 }
   0x8   : > { %s1305_s24 = scalar_select %p111_p1, %s1206_s17, %s113_s22  }
   0x9   : > { %p1307_p5 = por %p124_p2, %p123_p0  ;;  %p1311_p6 = por %p130_p4, %p129_p3 }
   0xa   : > { %p867_p7 = scmp.ge.s32.totalorder %s1210_s18, 1  ;;  %p165_p8 = scmp.lt.s32.totalorder %s1210_s18, 3 }
   0xc   : > { %p166_p9 = pnand %p867_p7, %p165_p8 }
   0xd   : > { %s188_s29 = sand.u32 (!%p166_p9), 1, %s1202_s16   ;;  %p191_p10 = scmp.lt.s32.totalorder (!%p166_p9), %s1290_s19, 1 }
   0xe   : > { %169 = sbr.rel (%p166_p9) target bundleno = 1153 (0x481), region = 36  ;;  %s868_s8 = sshll.u32 (!%p166_p9), %s188_s29, 5 }
   0xf   : > { %s1423_s22 = scalar_lea.vmem (!%p166_p9), [#allocation3], %s868_s8  ;;  %s1429_s23 = smov (!%p166_p9), 0  }
  0x13   : > { %v197_v0 = vld [vmem:[%s1652_s2] sm:$0xff]  ;;  %v1325_v1 = vld [vmem:[%s1652_s2 + $0x8] sm:$0xff]  ;;  %v1330_v2 = vld [vmem:[%s1652_s2 + $0x10] sm:$0xff]  ;;  %v1228_v3 = vmov 0   ;;  %s192_s5 = scalar_select %p191_p10, %s1290_s19, 1  ;;  %v1425_v21 = vmov 0.0  }
  0x14   : > { %1119 = vset.pattern.permute.xlu0 %v1228_v3  ;;  %v1338_v4 = vld [vmem:[%s1653_s3] sm:$0xff]  ;;  %v1343_v5 = vld [vmem:[%s1653_s3 + $0x8] sm:$0xff]  ;;  %v1348_v6 = vld [vmem:[%s1653_s3 + $0x10] sm:$0xff]  ;;  %v1427_v22 = vmov 0.0  }
  0x15   : > { %220 = vperm.xlu0 %1119, %v197_v0   ;;  %v1353_v7 = vld [vmem:[%s1653_s3 + $0x18] sm:$0xff]  ;;  %v1358_v8 = vld [vmem:[%s1653_s3 + $0x20] sm:$0xff]  ;;  %v1363_v9 = vld [vmem:[%s1653_s3 + $0x28] sm:$0xff]  ;;  %s1026_s28 = smul.u32 40, %s192_s5 }
  0x16   : > { %v1369_v10 = vld [vmem:[%s1653_s3 + $0x30] sm:$0xff]  ;;  %v1374_v11 = vld [vmem:[%s1653_s3 + $0x38] sm:$0xff]  ;;  %v1379_v12 = vld [vmem:[%s1653_s3 + $0x40] sm:$0xff] }
  0x17   : > { %v1384_v13 = vld [vmem:[%s1653_s3 + $0x48] sm:$0xff]  ;;  %v1389_v14 = vld [vmem:[%s1653_s3 + $0x50] sm:$0xff]  ;;  %v1394_v15 = vld [vmem:[%s1653_s3 + $0x58] sm:$0xff]  ;;  %s1419_s20 = scalar_lea.vmem %s1650_s0, %s1026_s28 }
  0x18   : > { %v1399_v16 = vld [vmem:[%s1653_s3 + $0x60] sm:$0xff]  ;;  %v1404_v17 = vld [vmem:[%s1653_s3 + $0x68] sm:$0xff]  ;;  %v1409_v18 = vld [vmem:[%s1653_s3 + $0x70] sm:$0xff] }
  0x19   : > { %v1414_v19 = vld [vmem:[%s1653_s3 + $0x78] sm:$0xff] }
  0x90   : > { %v1421_v20 = vpop.permute.xlu0 %220 }
  0x91 LB: >> { %v241_v23 = vlaneseq  ;;  %v1229_v24 = vmov 1983009808   ;;  %s894_s8 = sshll.u32 %s1222_s23, 2  ;;  %s1230_s28 = smov 106   ;;  %v1232_v36 = vmov 0.0   ;;  %vm1239_vm0 = vmmov 0   ;;  %s1222_s23 = sphi %s1429_s23, %s228_s23   ;;  %v1218_v22 = vphi %v1427_v22, %v1658_v22   ;;  %v1214_v21 = vphi %v1425_v21, %v1657_v21  }
  0x92   : >> { %v239_v25 = vunpack.c.l.s4 %v1229_v24  ;;  %s233_s27 = scalar_lea.vmem %s1419_s20, %s894_s8  ;;  %s1231_s30 = smov 108   ;;  %938 = vmatprep.subr.bf16.mxu0 %v1232_v36  ;;  %956 = vmatprep.subr.mxu1 %v1232_v36  ;;  %vm304_vm1 = vcmask 867328   ;;  %vm290_vm2 = vcmask 883712   ;;  %vm262_vm3 = vcmask 1031168  }
  0x93   : >> { %v242_v26 = vshrl.u32 %v241_v23, 7  ;;  %v878_v28 = vld [vmem:[%s233_s27 + $0x8] sm:$0xf]  ;;  %v875_v29 = vld [vmem:[%s233_s27 + $0x4] sm:$0xf]  ;;  %s1233_s6 = smov 126   ;;  %957 = vmatpush3.msra.mxu1 %v1414_v19  ;;  %952 = vmatprep.mubr.msk.bf16.mxu0 %vm1239_vm0, %v1232_v36  ;;  %s555_s14 = scalar_lea.vmem %s1423_s22, %s894_s8 [#allocation3] }
  0x94   : >> { %v240_v27 = vunpack.c.0.s8 %v239_v25  ;;  %384 = vst [vmem:[#allocation2 + $0x24] sm:$0x3] %v878_v28  ;;  %v386_v31 = vcombine.low %v878_v28, %v878_v28  ;;  %v314_v32 = vcombine.low %v875_v29, %v875_v29  ;;  %v234_v33 = vld [vmem:[%s233_s27] sm:$0xf]  ;;  %s1234_s7 = smov 107   ;;  %958 = vmatprep.subr.mxu1 %v1232_v36  ;;  %s1235_s9 = smov 117   ;;  %988 = vmatprep.mubr.msk.f32.mxu1 %vm1239_vm0, %v1232_v36 }
  0x95   : >> { %235 = vst [vmem:[#allocation2] sm:$0x3] %v234_v33  ;;  %959 = vmatpush3.msra.mxu1 %v1409_v18  ;;  %s1236_s10 = smov 118   ;;  %s1237_s11 = smov 116   ;;  %v237_v40 = vcombine.low %v234_v33, %v234_v33  ;;  %vm297_vm4 = vcmask 875520   ;;  %vm276_vm5 = vcmask 957440  }
  0x96   : >> { %v1444_v30 = vsub.s32 %v240_v27, %v242_v26  ;;  %876 = vst.sshfl [vmem:[#allocation2 + $0x10] sm:$0x30 pattern:$0x76325410] %v314_v32  ;;  %960 = vmatprep.subr.mxu1 %v1232_v36  ;;  %s1238_s12 = smov 127   ;;  %vm269_vm6 = vcmask 965632  }
  0x97   : >> { %961 = vmatpush3.msra.mxu1 %v1404_v17  ;;  %vm283_vm7 = vcmask 949248   ;;  %vm509_vm8 = vcmask 1045504   ;;  %vm248_vm9 = vcmask 1039360   ;;  %s228_s23 = sadd.s32 1, %s1222_s23  }
  0x98   : >> { %v406_v34 = vrot.slane %v878_v28, %v1444_v30  ;;  %v393_v35 = vrot.slane %v386_v31, %v1444_v30  ;;  %v330_v37 = vrot.slane %v875_v29, %v1444_v30  ;;  %962 = vmatprep.subr.mxu1 %v1232_v36  ;;  %v321_v38 = vrot.slane %v314_v32, %v1444_v30  ;;  %p225_p11 = scmp.ge.s32.totalorder %s228_s23, 8  }
  0x99   : >> { %963 = vmatpush3.msra.mxu1 %v1399_v16  ;;  %v258_v39 = vrot.slane %v234_v33, %v1444_v30  ;;  %v244_v41 = vrot.slane %v237_v40, %v1444_v30  ;;  %vm700_vm10 = vcmask (%p225_p11), 7168   ;;  %1130 = vset.pattern.permute.xlu1 (%p225_p11), %v1228_v3 }
  0x9a   : >> { %443 = vrot.lane.b32.xlu1 %v406_v34, %s1230_s28  ;;  %431 = vrot.lane.b32.xlu0 %v406_v34, %s1231_s30 }
  0x9b   : >> { %964 = vmatprep.subr.mxu1 %v1232_v36  ;;  %1131 = vset.pattern.permute.xlu0 (%p225_p11), %v1228_v3 }
  0x9c   : >> { %965 = vmatpush3.msra.mxu1 %v1394_v15 }
  0x9d   : >> { %966 = vmatprep.subr.mxu1 %v1232_v36 }
  0x9e   : >> { %407 = vrot.lane.b32.xlu1 %v406_v34, %s1233_s6  ;;  %437 = vrot.lane.b32.xlu0 %v393_v35, %s1234_s7 }
  0x9f   : >> { %967 = vmatpush3.msra.mxu1 %v1389_v14 }
  0xa0   : >> { %968 = vmatprep.subr.mxu1 %v1232_v36 }
  0xa1   : >> { %969 = vmatpush3.msra.mxu1 %v1384_v13 }
  0xa2   : >> { %419 = vrot.lane.b32.xlu1 %v406_v34, %s1235_s9  ;;  %413 = vrot.lane.b32.xlu0 %v393_v35, %s1236_s10 }
  0xa3   : >> { %970 = vmatprep.subr.mxu1 %v1232_v36 }
  0xa4   : >> { %971 = vmatpush3.msra.mxu1 %v1379_v12 }
  0xa5   : >> { %972 = vmatprep.subr.mxu1 %v1232_v36 }
  0xa6   : >> { %425 = vrot.lane.b32.xlu0 %v393_v35, %s1237_s11  ;;  %367 = vrot.lane.b32.xlu1 %v330_v37, %s1234_s7 }
  0xa7   : >> { %973 = vmatpush3.msra.mxu1 %v1374_v11 }
  0xa8   : >> { %974 = vmatprep.subr.mxu1 %v1232_v36 }
  0xa9   : >> { %975 = vmatpush3.msra.mxu1 %v1369_v10 }
  0xaa   : >> { %394 = vrot.lane.b32.xlu1 %v393_v35, %s1238_s12  ;;  %373 = vrot.lane.b32.xlu0 %v321_v38, %s1230_s28 }
  0xab   : >> { %976 = vmatprep.subr.mxu1 %v1232_v36 }
  0xac   : >> { %977 = vmatpush3.msra.mxu1 %v1363_v9 }
  0xad   : >> { %978 = vmatprep.subr.mxu1 %v1232_v36 }
  0xae   : >> { %349 = vrot.lane.b32.xlu1 %v321_v38, %s1235_s9  ;;  %343 = vrot.lane.b32.xlu0 %v330_v37, %s1236_s10 }
  0xaf   : >> { %979 = vmatpush3.msra.mxu1 %v1358_v8 }
  0xb0   : >> { %980 = vmatprep.subr.mxu1 %v1232_v36 }
  0xb1   : >> { %981 = vmatpush3.msra.mxu1 %v1353_v7 }
  0xb2   : >> { %361 = vrot.lane.b32.xlu1 %v321_v38, %s1231_s30  ;;  %355 = vrot.lane.b32.xlu0 %v330_v37, %s1237_s11 }
  0xb3   : >> { %982 = vmatprep.subr.mxu1 %v1232_v36 }
  0xb4   : >> { %983 = vmatpush3.msra.mxu1 %v1348_v6 }
  0xb5   : >> { %984 = vmatprep.subr.mxu1 %v1232_v36 }
  0xb6   : >> { %331 = vrot.lane.b32.xlu1 %v330_v37, %s1238_s12  ;;  %301 = vrot.lane.b32.xlu0 %v258_v39, %s1230_s28 }
  0xb7   : >> { %985 = vmatpush3.msra.mxu1 %v1343_v5 }
  0xb8   : >> { %986 = vmatprep.subr.mxu1 %v1232_v36 }
  0xb9   : >> { %987 = vmatpush3.msra.mxu1 %v1338_v4 }
  0xba   : >> { %273 = vrot.lane.b32.xlu1 %v258_v39, %s1235_s9  ;;  %337 = vrot.lane.b32.xlu0 %v321_v38, %s1233_s6 }
  0xbe   : >> { %287 = vrot.lane.b32.xlu1 %v258_v39, %s1231_s30  ;;  %280 = vrot.lane.b32.xlu0 %v244_v41, %s1237_s11  ;;  %s1224_s11 = smov (%p225_p11), 0  }
  0xc2   : >> { %245 = vrot.lane.b32.xlu1 %v244_v41, %s1238_s12  ;;  %294 = vrot.lane.b32.xlu0 %v244_v41, %s1234_s7 }
  0xc6   : >> { %266 = vrot.lane.b32.xlu1 %v244_v41, %s1236_s10  ;;  %259 = vrot.lane.b32.xlu0 %v258_v39, %s1233_s6  ;;  %s1240_s6 = smov (%p225_p11), 0.0  }
 0x10c   : >> { %v444_v42 = vpop.permute.xlu1 %443  ;;  %v432_v43 = vpop.permute.xlu0 %431 }
 0x10d   : >> { %v445_v44 = vrot.slane %v444_v42, 4  ;;  %v433_v45 = vrot.slane %v432_v43, 4 }
 0x10f   : >> { %v446_v46 = vsel %vm304_vm1, %v444_v42, %v445_v44  ;;  %v434_v47 = vsel %vm290_vm2, %v432_v43, %v433_v45 }
 0x110   : >> { %448 = vst [vmem:[#allocation2 + $0x34] sm:$0x3] %v446_v46  ;;  %436 = vst [vmem:[#allocation2 + $0x30] sm:$0x3] %v434_v47  ;;  %v408_v48 = vpop.permute.xlu1 %407  ;;  %v438_v49 = vpop.permute.xlu0 %437 }
 0x111   : >> { %v409_v50 = vrot.slane %v408_v48, 4  ;;  %v439_v51 = vrot.slane %v438_v49, 4 }
 0x113   : >> { %v410_v52 = vsel %vm262_vm3, %v408_v48, %v409_v50  ;;  %v440_v53 = vsel %vm297_vm4, %v438_v49, %v439_v51 }
 0x114   : >> { %412 = vst [vmem:[#allocation2 + $0x28] sm:$0x3] %v410_v52  ;;  %442 = vst [vmem:[#allocation2 + $0x30] sm:$0xc] %v440_v53  ;;  %v420_v54 = vpop.permute.xlu1 %419  ;;  %v414_v55 = vpop.permute.xlu0 %413 }
 0x115   : >> { %v421_v56 = vrot.slane %v420_v54, 4  ;;  %v415_v57 = vrot.slane %v414_v55, 4 }
 0x117   : >> { %v422_v58 = vsel %vm276_vm5, %v420_v54, %v421_v56  ;;  %v416_v59 = vsel %vm269_vm6, %v414_v55, %v415_v57 }
 0x118   : >> { %424 = vst [vmem:[#allocation2 + $0x2c] sm:$0x3] %v422_v58  ;;  %418 = vst [vmem:[#allocation2 + $0x28] sm:$0xc] %v416_v59  ;;  %v426_v60 = vpop.permute.xlu0 %425  ;;  %v368_v61 = vpop.permute.xlu1 %367 }
 0x119   : >> { %v427_v62 = vrot.slane %v426_v60, 4  ;;  %v369_v63 = vrot.slane %v368_v61, 4 }
 0x11b   : >> { %v428_v0 = vsel %vm283_vm7, %v426_v60, %v427_v62  ;;  %v370_v23 = vsel %vm297_vm4, %v368_v61, %v369_v63  ;;  %v1123_v24 = vld [vmem:[#allocation2 + $0x30] sm:$0x3f]  }
 0x11c   : >> { %430 = vst [vmem:[#allocation2 + $0x2c] sm:$0xc] %v428_v0  ;;  %372 = vst [vmem:[#allocation2 + $0x20] sm:$0x3] %v370_v23  ;;  %v395_v25 = vpop.permute.xlu1 %394  ;;  %v374_v26 = vpop.permute.xlu0 %373  ;;  %v511_v29 = vsel %vm509_vm8, %v1123_v24, 0 }
 0x11d   : >> { %v396_v27 = vrot.slane %v395_v25, 4  ;;  %v375_v28 = vrot.slane %v374_v26, 4  ;;  %939 = vmatpush3.bf16.msra.mxu0 %v511_v29 }
 0x11e   : >> { %940 = vmatprep.subr.bf16.mxu0 %v1232_v36 }
 0x11f   : >> { %v397_v30 = vsel %vm248_vm9, %v395_v25, %v396_v27  ;;  %v376_v31 = vsel %vm304_vm1, %v374_v26, %v375_v28 }
 0x120   : >> { %399 = vst [vmem:[#allocation2 + $0x24] sm:$0xc] %v397_v30  ;;  %378 = vst [vmem:[#allocation2 + $0x20] sm:$0xc] %v376_v31  ;;  %v350_v32 = vpop.permute.xlu1 %349  ;;  %v344_v33 = vpop.permute.xlu0 %343 }
 0x121   : >> { %v351_v34 = vrot.slane %v350_v32, 4  ;;  %v345_v35 = vrot.slane %v344_v33, 4 }
 0x123   : >> { %v352_v37 = vsel %vm276_vm5, %v350_v32, %v351_v34  ;;  %v346_v38 = vsel %vm269_vm6, %v344_v33, %v345_v35  ;;  %v1124_v39 = vld [vmem:[#allocation2 + $0x28] sm:$0xff]  }
 0x124   : >> { %354 = vst [vmem:[#allocation2 + $0x18] sm:$0xc] %v352_v37  ;;  %348 = vst [vmem:[#allocation2 + $0x18] sm:$0x3] %v346_v38  ;;  %v362_v40 = vpop.permute.xlu1 %361  ;;  %v356_v41 = vpop.permute.xlu0 %355  ;;  %941 = vmatpush3.bf16.msra.mxu0 %v1124_v39 }
 0x125   : >> { %v363_v42 = vrot.slane %v362_v40, 4  ;;  %v357_v43 = vrot.slane %v356_v41, 4  ;;  %942 = vmatprep.subr.bf16.mxu0 %v1232_v36 }
 0x127   : >> { %v364_v44 = vsel %vm290_vm2, %v362_v40, %v363_v42  ;;  %v358_v45 = vsel %vm283_vm7, %v356_v41, %v357_v43  ;;  %v1125_v46 = vld [vmem:[#allocation2 + $0x20] sm:$0xff]  }
 0x128   : >> { %366 = vst [vmem:[#allocation2 + $0x1c] sm:$0xc] %v364_v44  ;;  %360 = vst [vmem:[#allocation2 + $0x1c] sm:$0x3] %v358_v45  ;;  %v332_v47 = vpop.permute.xlu1 %331  ;;  %v302_v48 = vpop.permute.xlu0 %301  ;;  %943 = vmatpush3.bf16.msra.mxu0 %v1125_v46  ;;  %v449_v40 = vld [vmem:[%s1651_s1] sm:$0xf] }
 0x129   : >> { %v333_v49 = vrot.slane %v332_v47, 4  ;;  %v303_v50 = vrot.slane %v302_v48, 4  ;;  %944 = vmatprep.subr.bf16.mxu0 %v1232_v36 }
 0x12b   : >> { %v334_v51 = vsel %vm248_vm9, %v332_v47, %v333_v49  ;;  %v305_v52 = vsel %vm304_vm1, %v302_v48, %v303_v50 }
 0x12c   : >> { %336 = vst [vmem:[#allocation2 + $0x14] sm:$0x3] %v334_v51  ;;  %307 = vst [vmem:[#allocation2 + $0x10] sm:$0x3] %v305_v52  ;;  %v274_v53 = vpop.permute.xlu1 %273  ;;  %v338_v54 = vpop.permute.xlu0 %337 }
 0x12d   : >> { %v275_v55 = vrot.slane %v274_v53, 4  ;;  %v339_v56 = vrot.slane %v338_v54, 4 }
 0x12f   : >> { %v277_v57 = vsel %vm276_vm5, %v274_v53, %v275_v55  ;;  %v340_v58 = vsel %vm262_vm3, %v338_v54, %v339_v56  ;;  %v1126_v59 = vld [vmem:[#allocation2 + $0x18] sm:$0xff]  }
 0x130   : >> { %279 = vst [vmem:[#allocation2 + $0x8] sm:$0x3] %v277_v57  ;;  %342 = vst [vmem:[#allocation2 + $0x14] sm:$0xc] %v340_v58  ;;  %v288_v60 = vpop.permute.xlu1 %287  ;;  %v281_v61 = vpop.permute.xlu0 %280  ;;  %945 = vmatpush3.bf16.msra.mxu0 %v1126_v59 }
 0x131   : >> { %v289_v62 = vrot.slane %v288_v60, 4  ;;  %v282_v63 = vrot.slane %v281_v61, 4  ;;  %946 = vmatprep.subr.bf16.mxu0 %v1232_v36 }
 0x133   : >> { %v291_v0 = vsel %vm290_vm2, %v288_v60, %v289_v62  ;;  %v284_v23 = vsel %vm283_vm7, %v281_v61, %v282_v63 }
 0x134   : >> { %293 = vst [vmem:[#allocation2 + $0xc] sm:$0x3] %v291_v0  ;;  %286 = vst [vmem:[#allocation2 + $0x8] sm:$0xc] %v284_v23  ;;  %v246_v24 = vpop.permute.xlu1 %245  ;;  %v295_v25 = vpop.permute.xlu0 %294 }
 0x135   : >> { %v247_v26 = vrot.slane %v246_v24, 4  ;;  %v296_v27 = vrot.slane %v295_v25, 4 }
 0x137   : >> { %v249_v28 = vsel %vm248_vm9, %v246_v24, %v247_v26  ;;  %v298_v29 = vsel %vm297_vm4, %v295_v25, %v296_v27  ;;  %v1127_v30 = vld [vmem:[#allocation2 + $0x10] sm:$0xff]  }
 0x138   : >> { %251 = vst [vmem:[#allocation2] sm:$0xc] %v249_v28  ;;  %300 = vst [vmem:[#allocation2 + $0xc] sm:$0xc] %v298_v29  ;;  %v267_v31 = vpop.permute.xlu1 %266  ;;  %v260_v32 = vpop.permute.xlu0 %259  ;;  %947 = vmatpush3.bf16.msra.mxu0 %v1127_v30 }
 0x139   : >> { %v268_v33 = vrot.slane %v267_v31, 4  ;;  %v261_v34 = vrot.slane %v260_v32, 4  ;;  %948 = vmatprep.subr.bf16.mxu0 %v1232_v36 }
 0x13b   : >> { %v270_v35 = vsel %vm269_vm6, %v267_v31, %v268_v33  ;;  %v263_v37 = vsel %vm262_vm3, %v260_v32, %v261_v34 }
 0x13c   : >> { %272 = vst [vmem:[#allocation2 + $0x4] sm:$0xc] %v270_v35  ;;  %265 = vst [vmem:[#allocation2 + $0x4] sm:$0x3] %v263_v37 }
 0x13f   : >> { %v1128_v38 = vld [vmem:[#allocation2 + $0x8] sm:$0xff]  }
 0x140   : >> { %949 = vmatpush3.bf16.msra.mxu0 %v1128_v38 }
 0x141   : >> { %950 = vmatprep.subr.bf16.mxu0 %v1232_v36 }
 0x143   : >> { %v1129_v39 = vld [vmem:[#allocation2] sm:$0xff]  }
 0x144   : >> { %951 = vmatpush3.bf16.msra.mxu0 %v1129_v39 }
 0x145   : >> { %991 = vmatprep.subr.mxu0 %v1232_v36 }
 0x147   : >> { %953 = vmatmul.mubr.msk.bf16.vlgmr.msra.gmra.mxu0 %vm290_vm2, %v449_v40 }
 0x148   : >> { %992 = vmatpush3.msra.mxu0 %v1414_v19  ;;  %1023 = vmatprep.mubr.msk.f32.mxu0 %vm1239_vm0, %v1232_v36 }
 0x149   : >> { %993 = vmatprep.subr.mxu0 %v1232_v36 }
 0x14a   : >> { %994 = vmatpush3.msra.mxu0 %v1409_v18 }
 0x14b   : >> { %995 = vmatprep.subr.mxu0 %v1232_v36 }
 0x14c   : >> { %996 = vmatpush3.msra.mxu0 %v1404_v17 }
 0x14d   : >> { %997 = vmatprep.subr.mxu0 %v1232_v36 }
 0x14e   : >> { %998 = vmatpush3.msra.mxu0 %v1399_v16 }
 0x14f   : >> { %999 = vmatprep.subr.mxu0 %v1232_v36 }
 0x150   : >> { %1000 = vmatpush3.msra.mxu0 %v1394_v15 }
 0x151   : >> { %1001 = vmatprep.subr.mxu0 %v1232_v36 }
 0x152   : >> { %1002 = vmatpush3.msra.mxu0 %v1389_v14 }
 0x153   : >> { %1003 = vmatprep.subr.mxu0 %v1232_v36 }
 0x154   : >> { %1004 = vmatpush3.msra.mxu0 %v1384_v13 }
 0x155   : >> { %1005 = vmatprep.subr.mxu0 %v1232_v36 }
 0x156   : >> { %1006 = vmatpush3.msra.mxu0 %v1379_v12 }
 0x157   : >> { %1007 = vmatprep.subr.mxu0 %v1232_v36 }
 0x158   : >> { %1008 = vmatpush3.msra.mxu0 %v1374_v11 }
 0x159   : >> { %1009 = vmatprep.subr.mxu0 %v1232_v36 }
 0x15a   : >> { %1010 = vmatpush3.msra.mxu0 %v1369_v10 }
 0x15b   : >> { %1011 = vmatprep.subr.mxu0 %v1232_v36 }
 0x15c   : >> { %1012 = vmatpush3.msra.mxu0 %v1363_v9 }
 0x15d   : >> { %1013 = vmatprep.subr.mxu0 %v1232_v36 }
 0x15e   : >> { %1014 = vmatpush3.msra.mxu0 %v1358_v8 }
 0x15f   : >> { %1015 = vmatprep.subr.mxu0 %v1232_v36 }
 0x160   : >> { %1016 = vmatpush3.msra.mxu0 %v1353_v7 }
 0x161   : >> { %1017 = vmatprep.subr.mxu0 %v1232_v36 }
 0x162   : >> { %1018 = vmatpush3.msra.mxu0 %v1348_v6 }
 0x163   : >> { %1019 = vmatprep.subr.mxu0 %v1232_v36 }
 0x164   : >> { %1020 = vmatpush3.msra.mxu0 %v1343_v5 }
 0x165   : >> { %1021 = vmatprep.subr.mxu0 %v1232_v36 }
 0x166   : >> { %1022 = vmatpush3.msra.mxu0 %v1338_v4 }
 0x207   : >> { %v547_v41 = vpop.f32.mrf.mxu0 }
 0x208   : >> { %v548_v42 = vadd.f32 %v547_v41, %v1421_v20 }
 0x209   : >> { %v954_v43 = vpop.f32.mrf.mxu0 }
 0x20a   : >> { %v553_v44 = vpack.c.bf16 %v548_v42, %v548_v42  ;;  %v628_v45 = vmul.f32 %v548_v42, %v548_v42  ;;  %989 = vmatmul.mubr.f32.vlgmr.msra.gmra.mxu1 %v548_v42 }
 0x20b   : >> { %v550_v46 = vpop.f32.mrf.mxu0 }
 0x20c   : >> { %556 = vst [vmem:[%s555_s14] sm:$0xf] %v553_v44  ;;  %1024 = vmatmul.mubr.f32.vlgmr.msra.gmra.mxu0 %v628_v45 }
 0x20d   : >> { %v955_v47 = vpop.f32.mrf.mxu0 }
 0x2ca   : >> { %v623_v48 = vpop.f32.mrf.mxu1 }
 0x2cb   : >> { %v627_v49 = vadd.f32 %v1218_v22, %v623_v48   ;;  %227 = sbr.rel (!%p225_p11) target bundleno = 145 (0x91), region = 92 }
 0x2cc   : >> { %v990_v50 = vpop.f32.mrf.mxu1  ;;  %v695_v36 = vpop.f32.mrf.mxu0 }
 0x2cd   : >> { %v699_v51 = vadd.f32 %v1214_v21, %v695_v36   ;;  %v1658_v22 = vmov %v627_v49 }
 0x2ce   : >> { %v1025_v52 = vpop.f32.mrf.mxu0  ;;  %v701_v22 = vsel (%p225_p11), %vm700_vm10, %v627_v49, 0.0 }
 0x2cf   : >> { %v1657_v21 = vmov %v699_v51  ;;  %702 = vadd.xlane.f32.xlu0 (%p225_p11), %v701_v22  ;;  %v711_v53 = vsel (%p225_p11), %vm700_vm10, %v699_v51, 0.0 }
 0x2d3   : > { %712 = vadd.xlane.f32.xlu0 %v711_v53 }
 0x358   : > { %v703_v54 = vpop.xlane.xlu0 %702 }
 0x359   : > { %v704_v55 = vrot.slane %v703_v54, 4 }
 0x35b   : > { %v705_v56 = vadd.f32 %v704_v55, %v703_v54 }
 0x35c   : > { %v713_v57 = vpop.xlane.xlu0 %712 }
 0x35d   : > { %v706_v58 = vrot.slane %v705_v56, 2  ;;  %v714_v59 = vrot.slane %v713_v57, 4 }
 0x35f   : > { %v715_v60 = vadd.f32 %v714_v59, %v713_v57  ;;  %v707_v61 = vadd.f32 %v706_v58, %v705_v56 }
 0x361   : > { %v716_v62 = vrot.slane %v715_v60, 2  ;;  %v708_v63 = vrot.slane %v707_v61, 1 }
 0x363   : > { %v717_v0 = vadd.f32 %v716_v62, %v715_v60  ;;  %v709_v4 = vadd.f32 %v708_v63, %v707_v61 }
 0x365   : > { %1027 = vpush %v709_v4  ;;  %v718_v5 = vrot.slane %v717_v0, 1 }
 0x367   : > { %v719_v6 = vadd.f32 %v718_v5, %v717_v0 }
 0x369   : > { %1029 = vpush %v719_v6 }
 0x396   : > { %s1028_s20 = spop %1027 }
 0x397   : > { %s721_s23 = smul.f32 0.00024414063, %s1028_s20 }
 0x399   : > { %s723_s8 = smul.f32 %s721_s23, %s721_s23  ;;  %v732_v10 = vstv %s721_s23 }
 0x39a   : > { %s1030_s27 = spop %1029 }
 0x39b   : > { %s722_s28 = smul.f32 0.00024414063, %s1030_s27 }
 0x39d   : > { %s724_s30 = ssub.f32 %s722_s28, %s723_s8 }
 0x39f   : > { %s725_s7 = smax.f32 %s1240_s6, %s724_s30 }
 0x3a0   : > { %s726_s9 = sadd.f32 1e-05, %s725_s7 }
 0x3a2   : > { %v727_v3 = vstv %s726_s9 }
 0x3a3   : > { %1132 = vrsqrt.f32 %v727_v3 }
 0x3b0   : > { %v1133_v7 = vpop.eup %1132 }
 0x3b1   : > { %1031 = vpush %v1133_v7 }
 0x3e2   : > { %s1032_s10 = spop %1031 }
 0x3e3   : > { %v730_v8 = vstv %s1032_s10 }
 0x3e4   : > { %v731_v9 = vmul.f32 %v1325_v1, %v730_v8 }
 0x3e6   : > { %v733_v11 = vmul.f32 %v732_v10, %v731_v9  ;;  %737 = vperm.xlu1 %1130, %v731_v9  }
 0x3e8   : > { %v734_v12 = vsub.f32 %v1330_v2, %v733_v11 }
 0x3ea   : > { %742 = vperm.xlu1 %1130, %v734_v12  }
 0x461   : > { %v738_v13 = vpop.permute.xlu1 %737 }
 0x465   : > { %v743_v14 = vpop.permute.xlu1 %742 }
 0x466 LB: >> { %s888_s12 = sshll.u32 %s1226_s11, 2  ;;  %s750_s11 = sadd.s32 1, %s1226_s11   ;;  %s1226_s11 = sphi %s1224_s11, %s750_s11  }
 0x467   : >> { %s752_s13 = scalar_lea.vmem %s1423_s22, %s888_s12 [#allocation3]  ;;  %p747_p12 = scmp.ge.s32.totalorder %s750_s11, 8  }
 0x468   : >> { %v753_v15 = vld [vmem:[%s752_s13] sm:$0xf]  ;;  %s895_s5 = sshll.u32 (%p747_p12), %s1290_s19, 9  ;;  %s774_s8 = sshll.u32 (%p747_p12), %s1423_s22, 4  ;;  %s1606_s8 = int_to_ptr.vmem [resolvable:$true] %s774_s8 }
 0x469   : >> { %v754_v16 = vunpack.c.l.bf16 %v753_v15  ;;  %s1603_s23 = scalar_lea.hbm (%p747_p12), %s1654_s4, %s895_s5  ;;  %s1610_s27 = scalar_lea.sflag (%p747_p12), [#allocation4], %s188_s29 }
 0x46a   : > { %s1134_s28 = scalar_lea.vmem (%p747_p12), %s1606_s8, 512  ;;  %s1241_s19 = smov (%p747_p12), [#allocation3]  }
 0x46b   : >> { %v755_v17 = vmul.f32 %v754_v16, %v738_v13  ;;  %p1135_p13 = scmp.ne.s32.totalorder (%p747_p12), %s1606_s8, %s1134_s28  ;;  %s1138_s30 = sshll.u32 (%p747_p12), %s1241_s19, 4  ;;  %s1139_s30 = int_to_ptr.vmem [resolvable:$false] %s1138_s30 }
 0x46c   : > { %s1140_s6 = scalar_lea.vmem (%p747_p12), %s1139_s30, 1024  ;;  %p1141_p2 = scmp.lt.s32.totalorder (%p747_p12), %s1606_s8, %s1139_s30 }
 0x46d   : >> { %v756_v18 = vadd.f32 %v755_v17, %v743_v14  ;;  %p1136_p0 = pnand (%p747_p12), %p1135_p13, %p1307_p5  ;;  %p1142_p3 = scmp.lt.s32.totalorder (%p747_p12), %s1140_s6, %s1134_s28 }
 0x46f   : >> { %v757_v1 = vmax.f32 %v756_v18, 0.0  ;;  %749 = sbr.rel (!%p747_p12) target bundleno = 1126 (0x466), region = 103  ;;  %p1137_p1 = pneg (%p747_p12), %p1136_p0 }
 0x470   : > { %p1143_p4 = por (%p747_p12), %p1142_p3, %p1141_p2 }
 0x471   : >> { %v758_v19 = vpack.c.bf16 %v757_v1, %v757_v1 }
 0x472   : > { %p1144_p7 = pnand (%p747_p12), %p1143_p4, %p1137_p1 }
 0x473   : >> { %759 = vst [vmem:[%s752_s13] sm:$0xf] %v758_v19 }
 0x474   : > { %1147 = shalt.err (!%p1144_p7)
}
 0x475   : > { %s1148_s29 = scalar_lea.hbm %s1603_s23, 512  ;;  %s1152_s9 = scalar_lea.hbm %s1654_s4, 1024 }
 0x476   : > { %p1149_p8 = scmp.ne.s32.totalorder %s1603_s23, %s1148_s29  ;;  %p1153_p11 = scmp.lt.s32.totalorder %s1603_s23, %s1654_s4 }
 0x477   : > { %p1154_p12 = scmp.lt.s32.totalorder %s1152_s9, %s1148_s29 }
 0x478   : > { %p1150_p9 = pnand %p1149_p8, %p1307_p5 }
 0x479   : > { %p1155_p13 = por %p1154_p12, %p1153_p11 }
 0x47a   : > { %p1151_p10 = pneg %p1150_p9 }
 0x47c   : > { %p1156_p0 = pnand %p1155_p13, %p1151_p10 }
 0x47e   : > { %1159 = shalt.err (!%p1156_p0)
}
 0x47f   : > { %s1242_s12 = smov 64   ;;  %s1243_s13 = smov 4  }
 0x480   : > { %1033 = dma.vmem_to_hbm [thread:$0]  (%p1307_p5), %s1606_s8, 512, %s1603_s23, %s1610_s27, %s1242_s12, %s1242_s12, %s1243_s13  }
 0x481 PF: > { %p1039_p1 = scmp.ge.s32.totalorder %s1210_s18, 2  ;;  %s789_s5 = sand.u32 1, %s1198_s15  }
 0x482   : > { %s790_s14 = scalar_lea.sflag [#allocation4], %s789_s5 }
 0x483   : > { %p1036_p2 = pnand %p1039_p1, %p1311_p6 }
 0x485   : > { %p1037_p3 = pneg %p1036_p2 }
 0x487   : > { %1193 = dma.done.wait (%p1037_p3), %s790_s14, 512  }
 0x488   : > { %1195 = vsyncadd (%p1037_p3), %s790_s14, 4294966784  ;;  %p14_p4 = scmp.ge.s32.totalorder %s1294_s21, 4   ;;  %s1659_s15 = smov %s1202_s16 }
 0x489   : > { %s1660_s16 = smov %s1206_s17  ;;  %s1661_s17 = smov %s1305_s24 }
 0x48a   : > { %s1662_s18 = smov %s1294_s21  ;;  %16 = sbr.rel (!%p14_p4) target bundleno = 3 (0x3), region = 114 }
 0x48f   :  { %795 = vsyncpa [#allocation4], 1 }
 0x490   :  { %797 = vsyncpa [#allocation4 + $0x1], 1 }

</bundles_post_ra>
